<compile_context>
chip_gen: v7x
topology: tpu7x:2x2x1
jax: 0.10.0
libtpu: 0.0.40
codegen_flags: <defaults>
</compile_context>

<pallas_src>
import functools
import math

import jax
import jax.numpy as jnp
from jax.experimental import pallas as pl
from jax.experimental.pallas import tpu as pltpu


def _round_up(x, m):
    return ((x + m - 1) // m) * m


def sab_kernel(x_ref, w_qkv_ref, b_qkv_ref, head_mask_ref, w_out_ref, b_out_ref,
               o_ref, *, seq_len, dim_out, num_heads):
    """One batch block (Bt elements) per grid step. All refs lane-dense/padded."""
    bt, s_pad, d_pad = x_ref.shape
    e_pad = w_out_ref.shape[0]
    head_dim = dim_out // num_heads
    scale = jnp.float32(1.0 / math.sqrt(head_dim))

    # ---- fused QKV projection: ONE (Bt*S, Dp) @ (Dp, 3*Ep) bf16 MXU matmul ----
    x2d = x_ref[...].reshape(bt * s_pad, d_pad).astype(jnp.bfloat16)
    qkv = jnp.dot(x2d, w_qkv_ref[...], preferred_element_type=jnp.float32)
    qkv = qkv + b_qkv_ref[...]                                  # f32 (Bt*S, 3*Ep)

    q = (qkv[:, :e_pad] * scale).reshape(bt, s_pad, e_pad)
    k = qkv[:, e_pad:2 * e_pad].reshape(bt, s_pad, e_pad)
    v = qkv[:, 2 * e_pad:].reshape(bt, s_pad, e_pad)

    # ---- stacked-head attention (no per-head loop) ----
    # hmask[h, c] = 1 iff column c belongs to head h (precomputed in wrapper).
    hmask = head_mask_ref[...]                                  # (H, Ep) f32
    q_stk = (q[:, None, :, :] * hmask[None, :, None, :]
             ).reshape(bt, num_heads * s_pad, e_pad)            # (Bt, H*S, Ep)

    # All heads' scores in one batched bf16 matmul: row block h == q_h @ k_h^T
    # because q_stk row block h only has head-h columns live.
    s = jnp.einsum('bqe,bke->bqk',
                   q_stk.astype(jnp.bfloat16), k.astype(jnp.bfloat16),
                   preferred_element_type=jnp.float32)          # (Bt, H*S, S)

    if seq_len < s_pad:                                         # mask padded keys
        key_idx = jax.lax.broadcasted_iota(jnp.int32, s.shape, 2)
        s = jnp.where(key_idx < seq_len, s, jnp.float32(-1e30))

    # Softmax reduces over the full minor axis -> plain max/sum, no reshape.
    s = s - jnp.max(s, axis=-1, keepdims=True)
    p = jnp.exp(s)
    p = p * pl.reciprocal(jnp.sum(p, axis=-1, keepdims=True), approx=True)

    o_stk = jnp.einsum('bqk,bke->bqe',
                       p.astype(jnp.bfloat16), v.astype(jnp.bfloat16),
                       preferred_element_type=jnp.float32)      # (Bt, H*S, Ep)

    # Fold head-stacked rows back into concatenated head columns.
    o_cat = jnp.sum(o_stk.reshape(bt, num_heads, s_pad, e_pad)
                    * hmask[None, :, None, :], axis=1)          # (Bt, S, Ep)

    # ---- output projection ----
    out = jnp.dot(o_cat.reshape(bt * s_pad, e_pad).astype(jnp.bfloat16),
                  w_out_ref[...], preferred_element_type=jnp.float32)
    out = out + b_out_ref[...]
    o_ref[...] = out.reshape(bt, s_pad, e_pad).astype(o_ref.dtype)


def sab_forward(x, params, num_heads, *, block_b=None):
    """x: (S, B, dim_in), seq-first like nn.MultiheadAttention's default layout.
    Returns (S, B, dim_out). Weights are stored (in_features, out_features)."""
    (wq, bq, wk, bk, wv, bv,
     wqi, bqi, wki, bki, wvi, bvi, wo, bo) = params
    S, B, dim_in = x.shape
    dim_out = wq.shape[1]
    assert dim_out % num_heads == 0
    head_dim = dim_out // num_heads

    s_pad = _round_up(S, 8)            # f32 sublane
    d_pad = _round_up(dim_in, 128)     # lane-dense input features
    e_pad = _round_up(dim_out, 128)    # lane-dense output features

    # Algebraic fusion of fc_* with the MHA in_proj:
    #   (x @ Wp + bp) @ Wi + bi == x @ (Wp @ Wi) + (bp @ Wi + bi)
    def fuse(wp, bp, wi, bi):
        return wp @ wi, bp @ wi + bi

    wq_f, bq_f = fuse(wq, bq, wqi, bqi)
    wk_f, bk_f = fuse(wk, bk, wki, bki)
    wv_f, bv_f = fuse(wv, bv, wvi, bvi)

    def pad2(w, r, c):
        return jnp.pad(w, ((0, r - w.shape[0]), (0, c - w.shape[1])))

    def pad1(b, c):
        return jnp.pad(b, (0, c - b.shape[0]))

    # Q|K|V fused weights concatenated along the output axis -> one projection.
    w_qkv = jnp.concatenate(
        [pad2(wq_f, d_pad, e_pad), pad2(wk_f, d_pad, e_pad),
         pad2(wv_f, d_pad, e_pad)], axis=1).astype(jnp.bfloat16)   # (Dp, 3*Ep)
    b_qkv = jnp.concatenate(
        [pad1(bq_f, e_pad), pad1(bk_f, e_pad),
         pad1(bv_f, e_pad)])[None, :].astype(jnp.float32)          # (1, 3*Ep)
    w_out = pad2(wo, e_pad, e_pad).astype(jnp.bfloat16)            # (Ep, Ep)
    b_out = pad1(bo, e_pad)[None, :].astype(jnp.float32)           # (1, Ep)

    # Per-head column masks, precomputed once (not re-built per grid step).
    lane = jnp.arange(e_pad)[None, :]
    hidx = jnp.arange(num_heads)[:, None]
    head_mask = ((lane >= hidx * head_dim)
                 & (lane < (hidx + 1) * head_dim)).astype(jnp.float32)

    # Batch blocking: target MXU M = Bt * S_pad ~= 256 (v6e-friendly; on v7x a
    # smaller Bt keeps >=2 grid blocks for both TensorCores).
    if block_b is None:
        block_b = max(1, min(B, 256 // s_pad))
    block_b = max(1, min(block_b, B))
    b_padded = _round_up(B, block_b)
    grid_b = b_padded // block_b

    # Batch-major zero-padded activations: (B_pad, S_pad, D_in_pad), f32
    # (cast to bf16 inside the kernel right before the projection dot).
    xb = jnp.transpose(x, (1, 0, 2)).astype(jnp.float32)
    xb = jnp.pad(xb, ((0, b_padded - B), (0, s_pad - S), (0, d_pad - dim_in)))

    # Rough VMEM budget: double-buffered blocked I/O + resident weights +
    # f32 intermediates, with 3x headroom, capped at 64 MiB (v7x physical).
    est = (2 * block_b * s_pad * (d_pad + e_pad) * 4
           + 2 * (w_qkv.size * 2 + w_out.size * 2
                  + (b_qkv.size + b_out.size + head_mask.size) * 4)
           + block_b * s_pad * (4 * e_pad + 2 * num_heads * e_pad
                                + 2 * num_heads * s_pad) * 4)
    vmem_limit = int(min(64 * 1024 * 1024, max(32 * 1024 * 1024, 3 * est)))

    kernel = functools.partial(sab_kernel, seq_len=S, dim_out=dim_out,
                               num_heads=num_heads)

    out = pl.pallas_call(
        kernel,
        out_shape=jax.ShapeDtypeStruct((b_padded, s_pad, e_pad), jnp.float32),
        grid=(grid_b,),
        in_specs=[
            pl.BlockSpec((block_b, s_pad, d_pad), lambda i: (i, 0, 0)),
            # Weights/biases/masks: constant index_map -> VMEM-resident.
            pl.BlockSpec((d_pad, 3 * e_pad), lambda i: (0, 0)),
            pl.BlockSpec((1, 3 * e_pad), lambda i: (0, 0)),
            pl.BlockSpec((num_heads, e_pad), lambda i: (0, 0)),
            pl.BlockSpec((e_pad, e_pad), lambda i: (0, 0)),
            pl.BlockSpec((1, e_pad), lambda i: (0, 0)),
        ],
        out_specs=pl.BlockSpec((block_b, s_pad, e_pad), lambda i: (i, 0, 0)),
        compiler_params=pltpu.CompilerParams(
            dimension_semantics=("parallel",),
            vmem_limit_bytes=vmem_limit),
    )(xb, w_qkv, b_qkv, head_mask, w_out, b_out)

    # (B_pad, S_pad, E_pad) -> (S, B, dim_out), matching nn.MultiheadAttention.
    return jnp.transpose(out[:B, :S, :dim_out], (1, 0, 2))


def sab_reference(x, params, num_heads):
    """Pure-JAX f32 reference of the same SAB forward math (unfused)."""
    (wq, bq, wk, bk, wv, bv,
     wqi, bqi, wki, bki, wvi, bvi, wo, bo) = params
    S, B, _ = x.shape
    E = wq.shape[1]
    hd = E // num_heads
    q = ((x @ wq + bq) @ wqi + bqi) * (1.0 / math.sqrt(hd))
    k = (x @ wk + bk) @ wki + bki
    v = (x @ wv + bv) @ wvi + bvi

    def split(t):  # (S, B, E) -> (B, H, S, hd)
        return t.reshape(S, B, num_heads, hd).transpose(1, 2, 0, 3)

    qh, kh, vh = split(q), split(k), split(v)
    s = jnp.einsum('bhqd,bhkd->bhqk', qh, kh)
    p = jax.nn.softmax(s, axis=-1)
    o = jnp.einsum('bhqk,bhkd->bhqd', p, vh)
    o = o.transpose(2, 0, 1, 3).reshape(S, B, E)
    return o @ wo + bo


def init_params(key, dim_in, dim_out):
    """nn.Linear-style uniform init; weights stored (in, out)."""
    ks = jax.random.split(key, 14)

    def lin(kw, kb, fan_in, fan_out):
        bound = 1.0 / math.sqrt(fan_in)
        w = jax.random.uniform(kw, (fan_in, fan_out), jnp.float32, -bound, bound)
        b = jax.random.uniform(kb, (fan_out,), jnp.float32, -bound, bound)
        return w, b

    wq, bq = lin(ks[0], ks[1], dim_in, dim_out)       # fc_q
    wk, bk = lin(ks[2], ks[3], dim_in, dim_out)       # fc_k
    wv, bv = lin(ks[4], ks[5], dim_in, dim_out)       # fc_v
    wqi, bqi = lin(ks[6], ks[7], dim_out, dim_out)    # MHA in_proj (Q)
    wki, bki = lin(ks[8], ks[9], dim_out, dim_out)    # MHA in_proj (K)
    wvi, bvi = lin(ks[10], ks[11], dim_out, dim_out)  # MHA in_proj (V)
    wo, bo = lin(ks[12], ks[13], dim_out, dim_out)    # MHA out_proj
    return (wq, bq, wk, bk, wv, bv, wqi, bqi, wki, bki, wvi, bvi, wo, bo)


if __name__ == "__main__":
    dim_in, dim_out, num_heads = 16, 32, 4
    seq, batch = 8, 2

    key = jax.random.PRNGKey(0)
    kx, kp = jax.random.split(key)
    x = jax.random.normal(kx, (seq, batch, dim_in), jnp.float32)
    params = init_params(kp, dim_in, dim_out)

    out = sab_forward(x, params, num_heads)
    jax.block_until_ready(out)

    ref = sab_reference(x, params, num_heads)
    assert out.shape == (seq, batch, dim_out)
    # bf16 matmul operands + fused projection weights + EUP approx reciprocal
    # relax the tolerance vs. a pure-f32 path.
    err = float(jnp.max(jnp.abs(out - ref)))
    assert jnp.allclose(out, ref, atol=2e-2, rtol=2e-2), err

    print("KERNEL_OK")
</pallas_src>

<mosaic_0001>
module attributes {stable_mosaic.version = 11 : i64} {
  func.func @sab_kernel(%arg0: i32, %arg1: memref<2x8x128xf32, #tpu.memory_space<vmem>>, %arg2: memref<128x384xbf16, #tpu.memory_space<vmem>>, %arg3: memref<1x384xf32, #tpu.memory_space<vmem>>, %arg4: memref<4x128xf32, #tpu.memory_space<vmem>>, %arg5: memref<128x128xbf16, #tpu.memory_space<vmem>>, %arg6: memref<1x128xf32, #tpu.memory_space<vmem>>, %arg7: memref<2x8x128xf32, #tpu.memory_space<vmem>>) attributes {dimension_semantics = [#tpu.dimension_semantics<parallel>], iteration_bounds = array<i64: 1>, scalar_prefetch = 0 : i64, scratch_operands = 0 : i64, tpu.core_type = #tpu.core_type<tc>, window_params = [{transform_indices = @transform_0, window_bounds = array<i64: 2, 8, 128>}, {pipeline_mode = #tpu.pipeline_mode<synchronous>, transform_indices = @transform_1, window_bounds = array<i64: 128, 384>}, {pipeline_mode = #tpu.pipeline_mode<synchronous>, transform_indices = @transform_2, window_bounds = array<i64: 1, 384>}, {pipeline_mode = #tpu.pipeline_mode<synchronous>, transform_indices = @transform_3, window_bounds = array<i64: 4, 128>}, {pipeline_mode = #tpu.pipeline_mode<synchronous>, transform_indices = @transform_4, window_bounds = array<i64: 128, 128>}, {pipeline_mode = #tpu.pipeline_mode<synchronous>, transform_indices = @transform_5, window_bounds = array<i64: 1, 128>}, {transform_indices = @transform_6, window_bounds = array<i64: 2, 8, 128>}]} {
    %c0 = arith.constant 0 : index
    %c0_0 = arith.constant 0 : index
    %c0_1 = arith.constant 0 : index
    %0 = vector.load %arg1[%c0, %c0_0, %c0_1] : memref<2x8x128xf32, #tpu.memory_space<vmem>>, vector<2x8x128xf32>
    %1 = vector.shape_cast %0 : vector<2x8x128xf32> to vector<16x128xf32>
    %2 = arith.truncf %1 : vector<16x128xf32> to vector<16x128xbf16>
    %c0_2 = arith.constant 0 : index
    %c0_3 = arith.constant 0 : index
    %3 = vector.load %arg2[%c0_2, %c0_3] : memref<128x384xbf16, #tpu.memory_space<vmem>>, vector<128x384xbf16>
    %cst = arith.constant dense<0.000000e+00> : vector<16x384xf32>
    %4 = tpu.matmul %2, %3, %cst {dimension_numbers = #tpu.dot_dimension_numbers<[1], [0], [0], [1], [0, 0, 1, 1], [], []>} : vector<16x128xbf16>, vector<128x384xbf16>, vector<16x384xf32> -> vector<16x384xf32>
    %c0_4 = arith.constant 0 : index
    %c0_5 = arith.constant 0 : index
    %5 = vector.load %arg3[%c0_4, %c0_5] : memref<1x384xf32, #tpu.memory_space<vmem>>, vector<1x384xf32>
    %6 = vector.broadcast %5 : vector<1x384xf32> to vector<16x384xf32>
    %7 = arith.addf %4, %6 : vector<16x384xf32>
    %8 = vector.extract_strided_slice %7 {offsets = [0, 0], sizes = [16, 128], strides = [1, 1]} : vector<16x384xf32> to vector<16x128xf32>
    %cst_6 = arith.constant 0.353553385 : f32
    %9 = vector.broadcast %cst_6 : f32 to vector<16x128xf32>
    %10 = arith.mulf %8, %9 : vector<16x128xf32>
    %11 = vector.shape_cast %10 : vector<16x128xf32> to vector<2x8x128xf32>
    %12 = vector.extract_strided_slice %7 {offsets = [0, 128], sizes = [16, 128], strides = [1, 1]} : vector<16x384xf32> to vector<16x128xf32>
    %13 = vector.shape_cast %12 : vector<16x128xf32> to vector<2x8x128xf32>
    %14 = vector.extract_strided_slice %7 {offsets = [0, 256], sizes = [16, 128], strides = [1, 1]} : vector<16x384xf32> to vector<16x128xf32>
    %15 = vector.shape_cast %14 : vector<16x128xf32> to vector<2x8x128xf32>
    %c0_7 = arith.constant 0 : index
    %c0_8 = arith.constant 0 : index
    %16 = vector.load %arg4[%c0_7, %c0_8] : memref<4x128xf32, #tpu.memory_space<vmem>>, vector<4x128xf32>
    %17 = vector.shape_cast %11 : vector<2x8x128xf32> to vector<2x1x8x128xf32>
    %18 = vector.shape_cast %16 : vector<4x128xf32> to vector<1x4x1x128xf32>
    %19 = vector.broadcast %17 : vector<2x1x8x128xf32> to vector<2x4x8x128xf32>
    %20 = vector.broadcast %18 : vector<1x4x1x128xf32> to vector<2x4x8x128xf32>
    %21 = arith.mulf %19, %20 : vector<2x4x8x128xf32>
    %22 = vector.shape_cast %21 : vector<2x4x8x128xf32> to vector<2x32x128xf32>
    %23 = arith.truncf %22 : vector<2x32x128xf32> to vector<2x32x128xbf16>
    %24 = arith.truncf %13 : vector<2x8x128xf32> to vector<2x8x128xbf16>
    "tpu.trace_start"() <{level = 10 : i32, message = "bqe,bke->bqk"}> : () -> ()
    %cst_9 = arith.constant dense<0.000000e+00> : vector<2x32x8xf32>
    %25 = tpu.matmul %23, %24, %cst_9 {dimension_numbers = #tpu.dot_dimension_numbers<[2], [2], [1], [1], [0, 0, 0, 1, 1, 1], [0], [0]>} : vector<2x32x128xbf16>, vector<2x8x128xbf16>, vector<2x32x8xf32> -> vector<2x32x8xf32>
    "tpu.trace_stop"() : () -> ()
    %cst_10 = arith.constant dense<0xFF800000> : vector<2x32xf32>
    %26 = vector.multi_reduction <maximumf>, %25, %cst_10 [2] : vector<2x32x8xf32> to vector<2x32xf32>
    %27 = vector.shape_cast %26 : vector<2x32xf32> to vector<2x32x1xf32>
    %28 = vector.broadcast %27 : vector<2x32x1xf32> to vector<2x32x8xf32>
    %29 = arith.subf %25, %28 : vector<2x32x8xf32>
    %30 = math.exp %29 : vector<2x32x8xf32>
    %cst_11 = arith.constant dense<0.000000e+00> : vector<2x32xf32>
    %31 = vector.multi_reduction <add>, %30, %cst_11 [2] : vector<2x32x8xf32> to vector<2x32xf32>
    %32 = vector.shape_cast %31 : vector<2x32xf32> to vector<2x32x1xf32>
    %33 = tpu.reciprocal %32 {approx = true} : vector<2x32x1xf32> -> vector<2x32x1xf32>
    %34 = vector.broadcast %33 : vector<2x32x1xf32> to vector<2x32x8xf32>
    %35 = arith.mulf %30, %34 : vector<2x32x8xf32>
    %36 = arith.truncf %35 : vector<2x32x8xf32> to vector<2x32x8xbf16>
    %37 = arith.truncf %15 : vector<2x8x128xf32> to vector<2x8x128xbf16>
    "tpu.trace_start"() <{level = 10 : i32, message = "bqk,bke->bqe"}> : () -> ()
    %cst_12 = arith.constant dense<0.000000e+00> : vector<2x32x128xf32>
    %38 = tpu.matmul %36, %37, %cst_12 {dimension_numbers = #tpu.dot_dimension_numbers<[2], [1], [1], [2], [0, 0, 0, 1, 1, 2], [0], [0]>} : vector<2x32x8xbf16>, vector<2x8x128xbf16>, vector<2x32x128xf32> -> vector<2x32x128xf32>
    "tpu.trace_stop"() : () -> ()
    %39 = vector.shape_cast %38 : vector<2x32x128xf32> to vector<2x4x8x128xf32>
    %40 = vector.shape_cast %16 : vector<4x128xf32> to vector<1x4x1x128xf32>
    %41 = vector.broadcast %40 : vector<1x4x1x128xf32> to vector<2x4x8x128xf32>
    %42 = arith.mulf %39, %41 : vector<2x4x8x128xf32>
    %cst_13 = arith.constant dense<0.000000e+00> : vector<2x8x128xf32>
    %43 = vector.multi_reduction <add>, %42, %cst_13 [1] : vector<2x4x8x128xf32> to vector<2x8x128xf32>
    %44 = vector.shape_cast %43 : vector<2x8x128xf32> to vector<16x128xf32>
    %45 = arith.truncf %44 : vector<16x128xf32> to vector<16x128xbf16>
    %c0_14 = arith.constant 0 : index
    %c0_15 = arith.constant 0 : index
    %46 = vector.load %arg5[%c0_14, %c0_15] : memref<128x128xbf16, #tpu.memory_space<vmem>>, vector<128x128xbf16>
    %cst_16 = arith.constant dense<0.000000e+00> : vector<16x128xf32>
    %47 = tpu.matmul %45, %46, %cst_16 {dimension_numbers = #tpu.dot_dimension_numbers<[1], [0], [0], [1], [0, 0, 1, 1], [], []>} : vector<16x128xbf16>, vector<128x128xbf16>, vector<16x128xf32> -> vector<16x128xf32>
    %c0_17 = arith.constant 0 : index
    %c0_18 = arith.constant 0 : index
    %48 = vector.load %arg6[%c0_17, %c0_18] : memref<1x128xf32, #tpu.memory_space<vmem>>, vector<1x128xf32>
    %49 = vector.broadcast %48 : vector<1x128xf32> to vector<16x128xf32>
    %50 = arith.addf %47, %49 : vector<16x128xf32>
    %51 = vector.shape_cast %50 : vector<16x128xf32> to vector<2x8x128xf32>
    %c0_19 = arith.constant 0 : index
    %c0_20 = arith.constant 0 : index
    %c0_21 = arith.constant 0 : index
    %52 = vector.load %arg7[%c0_19, %c0_20, %c0_21] : memref<2x8x128xf32, #tpu.memory_space<vmem>>, vector<2x8x128xf32>
    tpu.vector_store %arg7[%c0_19, %c0_20, %c0_21], %51 {strides = array<i32>} : memref<2x8x128xf32, #tpu.memory_space<vmem>>, vector<2x8x128xf32>,
    return
  }
  func.func @transform_0(%arg0: i32) -> (i32, i32, i32) {
    %c0_i32 = arith.constant 0 : i32
    %c0_i32_0 = arith.constant 0 : i32
    %c0_i32_1 = arith.constant 0 : i32
    return %arg0, %c0_i32, %c0_i32_0 : i32, i32, i32
  }
  func.func @transform_1(%arg0: i32) -> (i32, i32) {
    %c0_i32 = arith.constant 0 : i32
    %c0_i32_0 = arith.constant 0 : i32
    %c0_i32_1 = arith.constant 0 : i32
    return %c0_i32, %c0_i32_0 : i32, i32
  }
  func.func @transform_2(%arg0: i32) -> (i32, i32) {
    %c0_i32 = arith.constant 0 : i32
    %c0_i32_0 = arith.constant 0 : i32
    %c0_i32_1 = arith.constant 0 : i32
    return %c0_i32, %c0_i32_0 : i32, i32
  }
  func.func @transform_3(%arg0: i32) -> (i32, i32) {
    %c0_i32 = arith.constant 0 : i32
    %c0_i32_0 = arith.constant 0 : i32
    %c0_i32_1 = arith.constant 0 : i32
    return %c0_i32, %c0_i32_0 : i32, i32
  }
  func.func @transform_4(%arg0: i32) -> (i32, i32) {
    %c0_i32 = arith.constant 0 : i32
    %c0_i32_0 = arith.constant 0 : i32
    %c0_i32_1 = arith.constant 0 : i32
    return %c0_i32, %c0_i32_0 : i32, i32
  }
  func.func @transform_5(%arg0: i32) -> (i32, i32) {
    %c0_i32 = arith.constant 0 : i32
    %c0_i32_0 = arith.constant 0 : i32
    %c0_i32_1 = arith.constant 0 : i32
    return %c0_i32, %c0_i32_0 : i32, i32
  }
  func.func @transform_6(%arg0: i32) -> (i32, i32, i32) {
    %c0_i32 = arith.constant 0 : i32
    %c0_i32_0 = arith.constant 0 : i32
    %c0_i32_1 = arith.constant 0 : i32
    return %arg0, %c0_i32, %c0_i32_0 : i32, i32, i32
  }
}

</mosaic_0001>

<bundles_post_ra>
// kernel: tpu_custom_call.1
= control target key start
LH: loop header
LB: loop body
LE: loop exit
PB: predicated region body
PF: predicated region fallthrough
CT: control target
= control target key end

     0   :  { %11 = vsyncpa [#allocation3], 0  ;;  %s1340_s0 = inlined_call_operand.hbm [shape: f32[2,8,128], index: 0, kind: input, shape index: {}]   ;;  %s1341_s1 = inlined_call_operand.hbm [shape: bf16[128,384], index: 1, kind: input, shape index: {}]   ;;  %s1342_s2 = inlined_call_operand.vmem [shape: f32[1,384], index: 2, kind: input, shape index: {}]   ;;  %s1343_s3 = inlined_call_operand.vmem [shape: f32[4,128], index: 3, kind: input, shape index: {}]   ;;  %s1344_s4 = inlined_call_operand.hbm [shape: bf16[128,128], index: 4, kind: input, shape index: {}]   ;;  %s1345_s5 = inlined_call_operand.vmem [shape: f32[1,128], index: 5, kind: input, shape index: {}]   ;;  %s1346_s6 = inlined_call_operand.hbm [shape: f32[2,8,128], index: 6, kind: output, shape index: {}]  }
   0x1   :  { %12 = vsyncpa [#allocation6], 0 }
   0x2   :  { %13 = vsyncpa [#allocation4], 0  ;;  %s1163_s21 = smov [#allocation5]   ;;  %s1069_s25 = scalar_lea.hbm %s1341_s1, 3072 }
   0x3   :  { %s31_s22 = sshll.u32 %s1163_s21, 4  ;;  %p1070_p0 = scmp.ne.s32.totalorder %s1341_s1, %s1069_s25  ;;  %s32_s22 = int_to_ptr.vmem [resolvable:$true] %s31_s22 }
   0x4   :  { %p1073_p1 = scmp.lt.u32.totalorder %s1069_s25, %s1341_s1 }
   0x6   :  { %p1075_p2 = pnand %p1073_p1, %p1070_p0 }
   0x8   :  { %1078 = shalt.err (!%p1075_p2)
}
   0x9   :  { %s1079_s30 = scalar_lea.vmem %s32_s22, 3072  ;;  %p1084_p4 = scmp.lt.s32.totalorder %s32_s22, %s32_s22 }
   0xa   :  { %p1080_p3 = scmp.ne.s32.totalorder %s32_s22, %s1079_s30  ;;  %p1085_p5 = scmp.lt.s32.totalorder %s1079_s30, %s1079_s30 }
   0xc   :  { %p1086_p6 = por %p1085_p5, %p1084_p4 }
   0xe   :  { %p1087_p7 = pnand %p1086_p6, %p1080_p3 }
  0x10   :  { %1090 = shalt.err (!%p1087_p7)
}
  0x11   :  { %s1164_s7 = smov 192   ;;  %s1165_s8 = smov 12  }
  0x12   :  { %37 = dma.hbm_to_vmem [thread:$0]  %s1341_s1, 3072, %s32_s22, [#allocation6], %s1164_s7, %s1164_s7, %s1165_s8  }
  0x13   :  { %s1166_s11 = smov [#allocation2]   ;;  %s1091_s15 = scalar_lea.hbm %s1340_s0, 256 }
  0x14   :  { %s19_s12 = sshll.u32 %s1166_s11, 4  ;;  %p1092_p8 = scmp.ne.s32.totalorder %s1340_s0, %s1091_s15  ;;  %s20_s12 = int_to_ptr.vmem [resolvable:$true] %s19_s12 }
  0x15   :  { %p1095_p9 = scmp.lt.u32.totalorder %s1091_s15, %s1340_s0 }
  0x17   :  { %p1097_p10 = pnand %p1095_p9, %p1092_p8 }
  0x19   :  { %1100 = shalt.err (!%p1097_p10)
}
  0x1a   :  { %s1101_s20 = scalar_lea.vmem %s20_s12, 256  ;;  %p1106_p12 = scmp.lt.s32.totalorder %s20_s12, %s20_s12 }
  0x1b   :  { %p1102_p11 = scmp.ne.s32.totalorder %s20_s12, %s1101_s20  ;;  %p1107_p13 = scmp.lt.s32.totalorder %s1101_s20, %s1101_s20 }
  0x1d   :  { %p1108_p0 = por %p1107_p13, %p1106_p12 }
  0x1f   :  { %p1109_p1 = pnand %p1108_p0, %p1102_p11 }
  0x21   :  { %1112 = shalt.err (!%p1109_p1)
}
  0x22   :  { %s1167_s1 = smov 128   ;;  %s1168_s21 = smov 8  }
  0x23   :  { %25 = dma.hbm_to_vmem [thread:$0]  %s1340_s0, 256, %s20_s12, [#allocation3], %s1167_s1, %s1167_s1, %s1168_s21  }
  0x24   :  { %s1169_s24 = smov [#allocation7]   ;;  %s1113_s28 = scalar_lea.hbm %s1344_s4, 1024 }
  0x25   :  { %s47_s25 = sshll.u32 %s1169_s24, 4  ;;  %p1114_p2 = scmp.ne.s32.totalorder %s1344_s4, %s1113_s28  ;;  %s48_s25 = int_to_ptr.vmem [resolvable:$true] %s47_s25 }
  0x26   :  { %p1117_p3 = scmp.lt.u32.totalorder %s1113_s28, %s1344_s4 }
  0x28   :  { %p1119_p4 = pnand %p1117_p3, %p1114_p2 }
  0x2a   :  { %1122 = shalt.err (!%p1119_p4)
}
  0x2b   :  { %s1123_s9 = scalar_lea.vmem %s48_s25, 1024  ;;  %p1128_p6 = scmp.lt.s32.totalorder %s48_s25, %s48_s25 }
  0x2c   :  { %p1124_p5 = scmp.ne.s32.totalorder %s48_s25, %s1123_s9  ;;  %p1129_p7 = scmp.lt.s32.totalorder %s1123_s9, %s1123_s9 }
  0x2e   :  { %p1130_p8 = por %p1129_p7, %p1128_p6 }
  0x30   :  { %p1131_p9 = pnand %p1130_p8, %p1124_p5 }
  0x32   :  { %1134 = shalt.err (!%p1131_p9)
}
  0x33   :  { %s1170_s0 = smov 64   ;;  %s1171_s10 = smov 4  }
  0x34   :  { %53 = dma.hbm_to_vmem [thread:$0]  %s1344_s4, 1024, %s48_s25, [#allocation6], %s1170_s0, %s1170_s0, %s1171_s10  }
  0x35   :  { %1157 = dma.done.wait [#allocation3], 256  }
  0x36   :  { %1158 = vsyncadd [#allocation3], 4294967040 }
  0x37   :  { %1159 = dma.done.wait [#allocation6], 4096  }
  0x38   :  { %1160 = vsyncadd [#allocation6], 4294963200  ;;  %v1172_v0 = vmov 0   ;;  %v1173_v1 = vmov 0.0   ;;  %v997_v2 = vld [vmem:[#allocation5 + $0x4] ss:$12 sps:$4 sm:$0xff]   ;;  %v103_v29 = vlaneseq }
  0x39   :  { %278 = vmatprep.mubr.bf16.mxu0 %v1172_v0  ;;  %917 = vmatprep.subr.bf16.mxu1 %v1173_v1  ;;  %v999_v3 = vld [vmem:[#allocation5] ss:$12 sps:$4 sm:$0xff]   ;;  %v1000_v4 = vld [vmem:[#allocation5 + $0x1c] ss:$12 sps:$4 sm:$0xff]   ;;  %v1002_v5 = vld [vmem:[#allocation5 + $0x18] ss:$12 sps:$4 sm:$0xff]  }
  0x3a   :  { %246 = vmatprep.subr.bf16.mxu0 %v997_v2  ;;  %v1003_v6 = vld [vmem:[#allocation5 + $0x34] ss:$12 sps:$4 sm:$0xff]   ;;  %v1005_v7 = vld [vmem:[#allocation5 + $0x30] ss:$12 sps:$4 sm:$0xff]   ;;  %v1006_v8 = vld [vmem:[#allocation5 + $0x4c] ss:$12 sps:$4 sm:$0xff]  }
  0x3b   :  { %247 = vmatpush1.bf16.msra.mxu0 %v999_v3  ;;  %v1008_v9 = vld [vmem:[#allocation5 + $0x48] ss:$12 sps:$4 sm:$0xff]   ;;  %v1009_v10 = vld [vmem:[#allocation5 + $0x64] ss:$12 sps:$4 sm:$0xff]   ;;  %v1022_v12 = vld [vmem:[#allocation5 + $0x20] ss:$12 sps:$4 sm:$0xff]  }
  0x3c   :  { %248 = vmatprep.subr.bf16.mxu0 %v1000_v4  ;;  %v1021_v11 = vld [vmem:[#allocation5 + $0x8] ss:$12 sps:$4 sm:$0xff]   ;;  %v1011_v13 = vld [vmem:[#allocation5 + $0x60] ss:$12 sps:$4 sm:$0xff]   ;;  %v1023_v15 = vld [vmem:[#allocation5 + $0x38] ss:$12 sps:$4 sm:$0xff]  }
  0x3d   :  { %918 = vmatpush3.bf16.msra.mxu1 %v1021_v11  ;;  %v1012_v14 = vld [vmem:[#allocation5 + $0x7c] ss:$12 sps:$4 sm:$0xff]   ;;  %v1014_v16 = vld [vmem:[#allocation5 + $0x78] ss:$12 sps:$4 sm:$0xff]   ;;  %v1015_v17 = vld [vmem:[#allocation5 + $0x94] ss:$12 sps:$4 sm:$0xff]  }
  0x3e   :  { %919 = vmatprep.subr.bf16.mxu1 %v1173_v1  ;;  %v1024_v18 = vld [vmem:[#allocation5 + $0x50] ss:$12 sps:$4 sm:$0xff]   ;;  %v1018_v20 = vld [vmem:[#allocation5 + $0xac] ss:$12 sps:$4 sm:$0xff]   ;;  %v1025_v21 = vld [vmem:[#allocation5 + $0x68] ss:$12 sps:$4 sm:$0xff]  }
  0x3f   :  { %249 = vmatpush1.bf16.msra.mxu0 %v1002_v5  ;;  %v1017_v19 = vld [vmem:[#allocation5 + $0x90] ss:$12 sps:$4 sm:$0xff]   ;;  %v1020_v22 = vld [vmem:[#allocation5 + $0xa8] ss:$12 sps:$4 sm:$0xff]   ;;  %v1026_v26 = vld [vmem:[#allocation5 + $0x80] ss:$12 sps:$4 sm:$0xff]  }
  0x40   :  { %250 = vmatprep.subr.bf16.mxu0 %v1003_v6  ;;  %v66_v23 = vld [vmem:[#allocation2] sm:$0xff]  ;;  %v67_v24 = vld [vmem:[#allocation2 + $0x8] sm:$0xff]  ;;  %vm1174_vm0 = vmmov 0   ;;  %v1175_v30 = vmov 1966171168   ;;  %v104_v32 = vshrl.u32 %v103_v29, 7 }
  0x41   :  { %920 = vmatpush3.bf16.msra.mxu1 %v1022_v12  ;;  %v68_v25 = vpack.c.bf16 %v67_v24, %v66_v23  ;;  %v1027_v27 = vld [vmem:[#allocation5 + $0x98] ss:$12 sps:$4 sm:$0xff]   ;;  %v1028_v28 = vld [vmem:[#allocation5 + $0xb0] ss:$12 sps:$4 sm:$0xff]   ;;  %933 = vmatprep.mubr.msk.bf16.mxu1 %vm1174_vm0, %v1173_v1  ;;  %v343_v31 = vunpack.c.l.s4 %v1175_v30  ;;  %vm591_vm1 = vcmask 1043456   ;;  %vm490_vm2 = vcmask 64512  }
  0x42   :  { %921 = vmatprep.subr.bf16.mxu1 %v1173_v1  ;;  %v873_v34 = vld.sshfl [vmem:[%s1343_s3] sm:$0x33 pattern:$0x75316420]  ;;  %v105_v37 = vsub.s32 0, %v104_v32  ;;  %v109_v39 = vsub.s32 1, %v104_v32 }
  0x43   :  { %251 = vmatpush1.bf16.msra.mxu0 %v1005_v7  ;;  %v344_v33 = vunpack.c.0.s8 %v343_v31  ;;  %v341_v35 = vcombine.high %v873_v34, %v873_v34  ;;  %v101_v38 = vld [vmem:[%s1342_s2] sm:$0x7]  ;;  %v113_v11 = vsub.s32 2, %v104_v32  ;;  %s1176_s16 = smov [#allocation8]  }
  0x44   :  { %252 = vmatprep.subr.bf16.mxu0 %v1006_v8  ;;  %v106_v42 = vrot.slane %v101_v38, %v105_v37  ;;  %v110_v43 = vrot.slane %v101_v38, %v109_v39  ;;  %s836_s17 = sshll.u32 %s1176_s16, 4  ;;  %s837_s17 = int_to_ptr.vmem [resolvable:$true] %s836_s17 }
  0x45   :  { %922 = vmatpush3.bf16.msra.mxu1 %v1023_v15  ;;  %v347_v36 = vsub.s32 %v344_v33, %v104_v32  ;;  %v114_v12 = vrot.slane %v101_v38, %v113_v11  ;;  %s1135_s18 = scalar_lea.vmem %s837_s17, 256  ;;  %p1140_p11 = scmp.lt.s32.totalorder %s837_s17, %s837_s17 }
  0x46   :  { %923 = vmatprep.subr.bf16.mxu1 %v1173_v1  ;;  %p1136_p10 = scmp.ne.s32.totalorder %s837_s17, %s1135_s18  ;;  %p1141_p12 = scmp.lt.s32.totalorder %s1135_s18, %s1135_s18 }
  0x47   :  { %253 = vmatpush1.bf16.msra.mxu0 %v1008_v9  ;;  %v348_v40 = vrot.slane %v873_v34, %v347_v36  ;;  %v355_v41 = vrot.slane %v341_v35, %v347_v36 }
  0x48   :  { %254 = vmatprep.subr.bf16.mxu0 %v1009_v10  ;;  %p1142_p13 = por %p1141_p12, %p1140_p11 }
  0x49   :  { %924 = vmatpush3.bf16.msra.mxu1 %v1024_v18  ;;  %v356_v45 = vcombine.high %v348_v40, %v348_v40  ;;  %v357_v46 = vcombine.high %v355_v41, %v355_v41  ;;  %v1268_v49 = vrot.slane %v348_v40, %v105_v37  ;;  %v1270_v52 = vrot.slane %v355_v41, %v105_v37 }
  0x4a   :  { %925 = vmatprep.subr.bf16.mxu1 %v1173_v1  ;;  %p1143_p0 = pnand %p1142_p13, %p1136_p10 }
  0x4b   :  { %255 = vmatpush1.bf16.msra.mxu0 %v1011_v13  ;;  %v1272_v56 = vrot.slane %v356_v45, %v105_v37  ;;  %v1274_v57 = vrot.slane %v357_v46, %v105_v37 }
  0x4c   :  { %256 = vmatprep.subr.bf16.mxu0 %v1012_v14 }
  0x4d   :  { %926 = vmatpush3.bf16.msra.mxu1 %v1025_v21 }
  0x4e   :  { %927 = vmatprep.subr.bf16.mxu1 %v1173_v1 }
  0x4f   :  { %257 = vmatpush1.bf16.msra.mxu0 %v1014_v16 }
  0x50   :  { %258 = vmatprep.subr.bf16.mxu0 %v1015_v17 }
  0x51   :  { %928 = vmatpush3.bf16.msra.mxu1 %v1026_v26 }
  0x52   :  { %929 = vmatprep.subr.bf16.mxu1 %v1173_v1 }
  0x53   :  { %259 = vmatpush1.bf16.msra.mxu0 %v1017_v19 }
  0x54   :  { %260 = vmatprep.subr.bf16.mxu0 %v1018_v20 }
  0x55   :  { %930 = vmatpush3.bf16.msra.mxu1 %v1027_v27 }
  0x56   :  { %931 = vmatprep.subr.bf16.mxu1 %v1173_v1 }
  0x57   :  { %261 = vmatpush1.bf16.msra.mxu0 %v1020_v22 }
  0x58   :  { %961 = vmatprep.subr.bf16.mxu0 %v1173_v1 }
  0x59   :  { %932 = vmatpush3.bf16.msra.mxu1 %v1028_v28 }
  0x5a   :  { %279 = vmatmul.mubr.bf16.vlgmr.msra.gmra.mrb[0].mxu0 %v68_v25 }
  0x5b   :  { %977 = vmatprep.mubr.msk.bf16.mxu0 %vm1174_vm0, %v1173_v1 }
  0x5c   :  { %934 = vmatmul.mubr.bf16.vlgmr.msra.gmra.mrb[0].mxu1 %v68_v25 }
 0x12d   :  { %v280_v44 = vpop.f32.mrb[0].mxu0 }
 0x12e   :  { %v281_v47 = vadd.f32 %v280_v44, %v106_v42  ;;  %v282_v48 = vpop.f32.mrb[1].mxu0 }
 0x12f   :  { %v283_v50 = vadd.f32 %v282_v48, %v110_v43  ;;  %v284_v51 = vpop.f32.mrb[2].mxu0  ;;  %v323_v13 = vpop.f32.mrb[0].mxu1 }
 0x130   :  { %v330_v53 = vmul.f32 0.35355338, %v281_v47  ;;  %v285_v54 = vadd.f32 %v284_v51, %v106_v42  ;;  %v286_v55 = vpop.f32.mrb[3].mxu0  ;;  %v324_v14 = vadd.f32 %v323_v13, %v114_v12  ;;  %v935_v15 = vpop.f32.mrb[1].mxu1 }
 0x131   :  { %v390_v58 = vpack.c.bf16 %v283_v50, %v283_v50  ;;  %v287_v59 = vadd.f32 %v286_v55, %v110_v43  ;;  %v326_v16 = vpop.f32.mrb[2].mxu1 }
 0x132   :  { %v331_v60 = vmul.f32 0.35355338, %v285_v54  ;;  %v378_v61 = vmul.f32 %v1268_v49, %v330_v53  ;;  %v379_v63 = vmul.f32 %v1270_v52, %v330_v53  ;;  %v380_v0 = vmul.f32 %v1272_v56, %v330_v53  ;;  %v936_v19 = vpop.f32.mrb[3].mxu1 }
 0x133   :  { %v391_v62 = vpack.c.bf16 %v287_v59, %v287_v59  ;;  %937 = vmatprep.subr.bf16.mxu1 %v390_v58  ;;  %v381_v2 = vmul.f32 %v1274_v57, %v330_v53  ;;  %v583_v17 = vpack.c.bf16 %v324_v14, %v324_v14  ;;  %v327_v18 = vadd.f32 %v326_v16, %v114_v12 }
 0x134   :  { %938 = vmatpush3.bf16.xpose.msra.mxu1 %v390_v58  ;;  %v386_v3 = vpack.c.bf16 %v379_v63, %v378_v61  ;;  %v382_v4 = vmul.f32 %v1268_v49, %v331_v60  ;;  %v383_v5 = vmul.f32 %v1270_v52, %v331_v60  ;;  %v384_v8 = vmul.f32 %v1272_v56, %v331_v60 }
 0x135   :  { %943 = vmatprep.subr.bf16.mxu1 %v391_v62  ;;  %v387_v6 = vpack.c.bf16 %v381_v2, %v380_v0  ;;  %v385_v9 = vmul.f32 %v1274_v57, %v331_v60  ;;  %v593_v20 = vsel %vm591_vm1, %v583_v17, 0  ;;  %v584_v21 = vpack.c.bf16 %v327_v18, %v327_v18 }
 0x136   :  { %939 = vmatprep.mubr.bf16.mxu1 %v386_v3  ;;  %v388_v7 = vpack.c.bf16 %v383_v5, %v382_v4 }
 0x137   :  { %v389_v10 = vpack.c.bf16 %v385_v9, %v384_v8  ;;  %v1284_v22 = vsel %vm591_vm1, %v584_v21, 0 }
 0x13b   :  { %940 = vmatmul.mubr.bf16.vlgmr.msra.gmra.mrb[4].mxu1 %v387_v6 }
 0x13c   :  { %944 = vmatpush3.bf16.xpose.msra.mxu1 %v391_v62  ;;  %945 = vmatprep.mubr.bf16.mxu1 %v388_v7 }
 0x13d   :  { %981 = vmatprep.subr.msk.bf16.mxu1 %vm591_vm1, %v583_v17 }
 0x143   :  { %946 = vmatmul.mubr.bf16.vlgmr.msra.gmra.mrb[8].mxu1 %v389_v10 }
 0x144   :  { %950 = vmatpush3.bf16.msra.mxu1 %v593_v20  ;;  %v1029_v20 = vld [vmem:[#allocation7] sm:$0xff]  }
 0x145   :  { %982 = vmatprep.subr.msk.bf16.mxu1 %vm591_vm1, %v584_v21  ;;  %962 = vmatpush3.bf16.msra.mxu0 %v1029_v20  ;;  %v1030_v21 = vld [vmem:[#allocation7 + $0x8] sm:$0xff]  }
 0x146   :  { %963 = vmatprep.subr.bf16.mxu0 %v1173_v1 }
 0x149   :  { %964 = vmatpush3.bf16.msra.mxu0 %v1030_v21 }
 0x14a   :  { %965 = vmatprep.subr.bf16.mxu0 %v1173_v1 }
 0x20e   :  { %v941_v23 = vpop.f32.mrb[4].mxu1 }
 0x20f   :  { %v426_v24 = vpop.f32.mrb[5].mxu1  ;;  %v497_v25 = vsel %vm490_vm2, %v941_v23, -inf }
 0x210   :  { %498 = vmax.xlane.f32.xlu1 %v497_v25  ;;  %v942_v26 = vpop.f32.mrb[6].mxu1  ;;  %v491_v27 = vsel %vm490_vm2, %v426_v24, -inf }
 0x211   :  { %492 = vmax.xlane.f32.xlu0 %v491_v27  ;;  %v429_v28 = vpop.f32.mrb[7].mxu1  ;;  %v500_v29 = vsel %vm490_vm2, %v942_v26, -inf }
 0x212   :  { %v494_v30 = vsel %vm490_vm2, %v429_v28, -inf }
 0x214   :  { %501 = vmax.xlane.f32.xlu1 %v500_v29 }
 0x215   :  { %495 = vmax.xlane.f32.xlu0 %v494_v30 }
 0x216   :  { %v947_v31 = vpop.f32.mrb[8].mxu1 }
 0x217   :  { %v475_v32 = vpop.f32.mrb[9].mxu1  ;;  %v509_v37 = vsel %vm490_vm2, %v947_v31, -inf }
 0x218   :  { %v948_v33 = vpop.f32.mrb[10].mxu1  ;;  %v503_v34 = vsel %vm490_vm2, %v475_v32, -inf }
 0x219   :  { %504 = vmax.xlane.f32.xlu0 %v503_v34  ;;  %v478_v35 = vpop.f32.mrb[11].mxu1  ;;  %v512_v38 = vsel %vm490_vm2, %v948_v33, -inf }
 0x21a   :  { %v506_v36 = vsel %vm490_vm2, %v478_v35, -inf }
 0x21b   :  { %507 = vmax.xlane.f32.xlu1 %v506_v36 }
 0x21d   :  { %510 = vmax.xlane.f32.xlu0 %v509_v37 }
 0x21f   :  { %513 = vmax.xlane.f32.xlu1 %v512_v38 }
 0x29d   :  { %v499_v39 = vpop.xlane.xlu1 %498 }
 0x29e   :  { %v517_v40 = vsub.f32 %v941_v23, %v499_v39  ;;  %v493_v41 = vpop.xlane.xlu0 %492  ;;  %v1031_v23 = vld [vmem:[#allocation7 + $0x10] sm:$0xff]  }
 0x29f   :  { %v515_v42 = vsub.f32 %v426_v24, %v493_v41  ;;  %966 = vmatpush3.bf16.msra.mxu0 %v1031_v23 }
 0x2a0   :  { %v527_v43 = vmul.f32 1.442695, %v517_v40  ;;  %967 = vmatprep.subr.bf16.mxu0 %v1173_v1 }
 0x2a1   :  { %v523_v44 = vmul.f32 1.442695, %v515_v42  ;;  %v502_v45 = vpop.xlane.xlu1 %501 }
 0x2a2   :  { %v518_v46 = vsub.f32 %v942_v26, %v502_v45  ;;  %v496_v47 = vpop.xlane.xlu0 %495 }
 0x2a3   :  { %1037 = vpow2.f32 %v523_v44  ;;  %v516_v48 = vsub.f32 %v429_v28, %v496_v47 }
 0x2a4   :  { %1039 = vpow2.f32 %v527_v43  ;;  %v529_v50 = vmul.f32 1.442695, %v518_v46 }
 0x2a5   :  { %v525_v51 = vmul.f32 1.442695, %v516_v48 }
 0x2a6   :  { %v505_v53 = vpop.xlane.xlu0 %504 }
 0x2a7   :  { %1041 = vpow2.f32 %v525_v51  ;;  %v519_v54 = vsub.f32 %v475_v32, %v505_v53 }
 0x2a8   :  { %v508_v55 = vpop.xlane.xlu1 %507  ;;  %1043 = vpow2.f32 %v529_v50 }
 0x2a9   :  { %v531_v58 = vmul.f32 1.442695, %v519_v54  ;;  %v520_v59 = vsub.f32 %v478_v35, %v508_v55  ;;  %v1032_v54 = vld [vmem:[#allocation7 + $0x18] sm:$0xff]   ;;  %v1033_v55 = vld [vmem:[#allocation7 + $0x20] sm:$0xff]  }
 0x2aa   :  { %v511_v60 = vpop.xlane.xlu0 %510  ;;  %968 = vmatpush3.bf16.msra.mxu0 %v1032_v54 }
 0x2ab   :  { %1045 = vpow2.f32 %v531_v58  ;;  %v533_v61 = vmul.f32 1.442695, %v520_v59  ;;  %v521_v62 = vsub.f32 %v947_v31, %v511_v60  ;;  %969 = vmatprep.subr.bf16.mxu0 %v1173_v1  ;;  %v1034_v58 = vld [vmem:[#allocation7 + $0x28] sm:$0xff]   ;;  %v1036_v59 = vld [vmem:[#allocation7 + $0x38] sm:$0xff]  }
 0x2ac   :  { %v514_v63 = vpop.xlane.xlu1 %513 }
 0x2ad   :  { %v1038_v0 = vpop.eup %1037  ;;  %1047 = vpow2.f32 %v533_v61  ;;  %v535_v2 = vmul.f32 1.442695, %v521_v62  ;;  %v522_v3 = vsub.f32 %v948_v33, %v514_v63 }
 0x2ae   :  { %v539_v4 = vsel %vm490_vm2, %v1038_v0, 0.0  ;;  %v1040_v5 = vpop.eup %1039  ;;  %970 = vmatpush3.bf16.msra.mxu0 %v1033_v55 }
 0x2af   :  { %1049 = vpow2.f32 %v535_v2  ;;  %v537_v6 = vmul.f32 1.442695, %v522_v3  ;;  %540 = vadd.xlane.f32.xlu0 %v539_v4  ;;  %v545_v8 = vsel %vm490_vm2, %v1040_v5, 0.0  ;;  %971 = vmatprep.subr.bf16.mxu0 %v1173_v1 }
 0x2b1   :  { %v1042_v7 = vpop.eup %1041  ;;  %1051 = vpow2.f32 %v537_v6 }
 0x2b2   :  { %v542_v9 = vsel %vm490_vm2, %v1042_v7, 0.0  ;;  %v1044_v10 = vpop.eup %1043  ;;  %972 = vmatpush3.bf16.msra.mxu0 %v1034_v58 }
 0x2b3   :  { %546 = vadd.xlane.f32.xlu0 %v545_v8  ;;  %543 = vadd.xlane.f32.xlu1 %v542_v9  ;;  %v548_v13 = vsel %vm490_vm2, %v1044_v10, 0.0 }
 0x2b4   :  { %973 = vmatprep.subr.bf16.mxu0 %v1173_v1 }
 0x2b5   :  { %v1046_v11 = vpop.eup %1045 }
 0x2b6   :  { %v551_v12 = vsel %vm490_vm2, %v1046_v11, 0.0 }
 0x2b7   :  { %v1048_v14 = vpop.eup %1047  ;;  %552 = vadd.xlane.f32.xlu0 %v551_v12  ;;  %549 = vadd.xlane.f32.xlu1 %v548_v13 }
 0x2b8   :  { %v554_v17 = vsel %vm490_vm2, %v1048_v14, 0.0 }
 0x2b9   :  { %v1050_v15 = vpop.eup %1049 }
 0x2ba   :  { %v557_v16 = vsel %vm490_vm2, %v1050_v15, 0.0 }
 0x2bb   :  { %v1052_v18 = vpop.eup %1051  ;;  %558 = vadd.xlane.f32.xlu0 %v557_v16  ;;  %555 = vadd.xlane.f32.xlu1 %v554_v17 }
 0x2bc   :  { %v560_v19 = vsel %vm490_vm2, %v1052_v18, 0.0 }
 0x2bf   :  { %561 = vadd.xlane.f32.xlu1 %v560_v19  ;;  %v878_v19 = vld [vmem:[%s1345_s5] ss:$0 sm:$0xff] }
 0x33c   :  { %v541_v24 = vpop.xlane.xlu0 %540 }
 0x33d   :  { %1053 = vrcp.f32 %v541_v24 }
 0x340   :  { %v547_v25 = vpop.xlane.xlu0 %546  ;;  %v544_v26 = vpop.xlane.xlu1 %543 }
 0x341   :  { %1055 = vrcp.f32 %v544_v26 }
 0x342   :  { %1057 = vrcp.f32 %v547_v25 }
 0x344   :  { %v553_v27 = vpop.xlane.xlu0 %552  ;;  %v550_v28 = vpop.xlane.xlu1 %549 }
 0x345   :  { %1059 = vrcp.f32 %v550_v28 }
 0x346   :  { %1061 = vrcp.f32 %v553_v27 }
 0x347   :  { %v1054_v31 = vpop.eup %1053 }
 0x348   :  { %v559_v29 = vpop.xlane.xlu0 %558  ;;  %v556_v30 = vpop.xlane.xlu1 %555  ;;  %v571_v34 = vmul.f32 %v1054_v31, %v1038_v0 }
 0x349   :  { %1063 = vrcp.f32 %v556_v30 }
 0x34a   :  { %1065 = vrcp.f32 %v559_v29 }
 0x34b   :  { %v1056_v32 = vpop.eup %1055 }
 0x34c   :  { %v562_v33 = vpop.xlane.xlu1 %561  ;;  %v572_v35 = vmul.f32 %v1056_v32, %v1042_v7  ;;  %v1058_v36 = vpop.eup %1057 }
 0x34d   :  { %1067 = vrcp.f32 %v562_v33  ;;  %v573_v39 = vmul.f32 %v1058_v36, %v1040_v5 }
 0x34e   :  { %v579_v37 = vpack.c.bf16 %v572_v35, %v571_v34 }
 0x34f   :  { %v1060_v38 = vpop.eup %1059 }
 0x350   :  { %v574_v40 = vmul.f32 %v1060_v38, %v1044_v10  ;;  %951 = vmatprep.mubr.msk.bf16.mxu1 %vm490_vm2, %v579_v37  ;;  %v1062_v41 = vpop.eup %1061 }
 0x351   :  { %v575_v45 = vmul.f32 %v1062_v41, %v1046_v11 }
 0x352   :  { %v580_v42 = vpack.c.bf16 %v574_v40, %v573_v39 }
 0x353   :  { %v1064_v43 = vpop.eup %1063 }
 0x354   :  { %v1066_v44 = vpop.eup %1065  ;;  %952 = vmatmul.mubr.msk.bf16.vlgmr.msra.gmra.mrb[12].mxu1 %vm490_vm2, %v580_v42  ;;  %v576_v46 = vmul.f32 %v1064_v43, %v1048_v14 }
 0x355   :  { %956 = vmatpush3.bf16.msra.mxu1 %v1284_v22  ;;  %v577_v50 = vmul.f32 %v1066_v44, %v1050_v15  ;;  %v1035_v22 = vld [vmem:[#allocation7 + $0x30] sm:$0xff]  }
 0x356   :  { %v581_v48 = vpack.c.bf16 %v576_v46, %v575_v45  ;;  %974 = vmatpush3.bf16.msra.mxu0 %v1035_v22 }
 0x357   :  { %v1068_v47 = vpop.eup %1067  ;;  %975 = vmatprep.subr.bf16.mxu0 %v1173_v1 }
 0x358   :  { %v578_v51 = vmul.f32 %v1068_v47, %v1052_v18  ;;  %957 = vmatprep.mubr.msk.bf16.mxu1 %vm490_vm2, %v581_v48 }
 0x35a   :  { %v582_v53 = vpack.c.bf16 %v578_v51, %v577_v50  ;;  %976 = vmatpush3.bf16.msra.mxu0 %v1036_v59 }
 0x35c   :  { %958 = vmatmul.mubr.msk.bf16.vlgmr.msra.gmra.mrb[16].mxu1 %vm490_vm2, %v582_v53 }
 0x427   :  { %v953_v60 = vpop.f32.mrb[12].mxu1 }
 0x428   :  { %v629_v61 = vpop.f32.mrb[13].mxu1  ;;  %v704_v3 = vmul.f32 %v953_v60, %v1272_v56 }
 0x429   :  { %v954_v62 = vpop.f32.mrb[14].mxu1  ;;  %v702_v0 = vmul.f32 %v629_v61, %v1268_v49 }
 0x42a   :  { %v632_v63 = vpop.f32.mrb[15].mxu1  ;;  %v705_v5 = vmul.f32 %v954_v62, %v1274_v57 }
 0x42b   :  { %v703_v2 = vmul.f32 %v632_v63, %v1270_v52 }
 0x42d   :  { %v710_v4 = vadd.f32 %v703_v2, %v702_v0 }
 0x42f   :  { %v711_v6 = vadd.f32 %v710_v4, %v704_v3  ;;  %v959_v7 = vpop.f32.mrb[16].mxu1 }
 0x430   :  { %v687_v8 = vpop.f32.mrb[17].mxu1  ;;  %v708_v13 = vmul.f32 %v959_v7, %v1272_v56 }
 0x431   :  { %v712_v9 = vadd.f32 %v711_v6, %v705_v5  ;;  %v960_v1 = vpop.f32.mrb[18].mxu1  ;;  %v706_v11 = vmul.f32 %v687_v8, %v1268_v49 }
 0x432   :  { %v690_v10 = vpop.f32.mrb[19].mxu1  ;;  %v709_v15 = vmul.f32 %v960_v1, %v1274_v57 }
 0x433   :  { %v707_v12 = vmul.f32 %v690_v10, %v1270_v52 }
 0x435   :  { %v713_v14 = vadd.f32 %v707_v12, %v706_v11 }
 0x437   :  { %v714_v16 = vadd.f32 %v713_v14, %v708_v13 }
 0x439   :  { %v715_v17 = vadd.f32 %v714_v16, %v709_v15 }
 0x43b   :  { %v716_v18 = vpack.c.bf16 %v715_v17, %v712_v9 }
 0x43d   :  { %978 = vmatmul.mubr.bf16.vlgmr.msra.gmra.mrb[4].mxu0 %v716_v18 }
 0x510   :  { %v822_v20 = vpop.f32.mrb[4].mxu0 }
 0x511   :  { %v823_v21 = vadd.f32 %v878_v19, %v822_v20  ;;  %v979_v49 = vpop.f32.mrb[5].mxu0 }
 0x512   :  { %v825_v23 = vpop.f32.mrb[6].mxu0 }
 0x513   :  { %829 = vst [vmem:[#allocation8] sm:$0xff] %v823_v21  ;;  %v826_v52 = vadd.f32 %v878_v19, %v825_v23  ;;  %v980_v56 = vpop.f32.mrb[7].mxu0 }
 0x515   :  { %830 = vst [vmem:[#allocation8 + $0x8] sm:$0xff] %v826_v52 }
 0x516   :  { %1146 = shalt.err (!%p1143_p0)
}
 0x517   :  { %s1147_s20 = scalar_lea.hbm %s1346_s6, 256 }
 0x518   :  { %p1148_p1 = scmp.ne.s32.totalorder %s1346_s6, %s1147_s20  ;;  %p1151_p2 = scmp.lt.u32.totalorder %s1147_s20, %s1346_s6 }
 0x51a   :  { %p1153_p3 = pnand %p1151_p2, %p1148_p1 }
 0x51c   :  { %1156 = shalt.err (!%p1153_p3)
}
 0x51d   :  { %842 = dma.vmem_to_hbm [thread:$0]  %s837_s17, 256, %s1346_s6, [#allocation4], %s1167_s1, %s1167_s1, %s1168_s21  }
 0x51e   :  { %1161 = dma.done.wait [#allocation4], 256  }
 0x51f   :  { %1162 = vsyncadd [#allocation4], 4294967040 }
 0x520   :  { %846 = vsyncpa [#allocation3], 1 }
 0x521   :  { %847 = vsyncpa [#allocation6], 1 }
 0x522   :  { %848 = vsyncpa [#allocation4], 1 }

</bundles_post_ra>
